<compile_context>
chip_gen: v6e
topology: v6e:2x2x1
jax: 0.10.0
libtpu: 0.0.40
codegen_flags: <defaults>
</compile_context>

<pallas_src>
import functools

import jax
import jax.numpy as jnp
from jax import lax
from jax.experimental import pallas as pl
from jax.experimental.pallas import tpu as pltpu


def _round_up(x: int, m: int) -> int:
    return (x + m - 1) // m * m


def _focal_loss_kernel(logits_ref, targets_ref, out_ref, acc_ref, *,
                       alpha, gamma, n_valid, tile_n):
    i = pl.program_id(0)

    @pl.when(i == 0)
    def _():
        acc_ref[...] = jnp.zeros_like(acc_ref)

    x = logits_ref[...].astype(jnp.float32)          # (tile_n, c_pad)
    t = targets_ref[...]                              # (tile_n, 1) int32

    # Numerically stable log-sum-exp along the class (lane) axis.
    m = jnp.max(x, axis=-1, keepdims=True)            # (tile_n, 1)
    z = x - m                                          # (tile_n, c_pad)
    lse = jnp.log(jnp.sum(jnp.exp(z), axis=-1, keepdims=True))  # (tile_n, 1)

    # log p(target) = z[target] - lse; gather via one-hot mask (no dynamic gather).
    class_ids = lax.broadcasted_iota(jnp.int32, z.shape, 1)      # (tile_n, c_pad)
    z_t = jnp.sum(jnp.where(class_ids == t, z, 0.0), axis=-1, keepdims=True)
    ce = lse - z_t                                     # (tile_n, 1)

    # Focal weighting: alpha * (1 - pt)^gamma * ce, pt = exp(-ce).
    pt = jnp.exp(-ce)
    omp = 1.0 - pt
    if gamma == 2:                                     # avoid float pow -> log/exp on EUP
        w = omp * omp
    else:
        w = omp ** gamma
    focal = alpha * w * ce                             # (tile_n, 1)

    # Mask padded batch rows out of the reduction.
    row = lax.broadcasted_iota(jnp.int32, (tile_n, 1), 0) + i * tile_n
    focal = jnp.where(row < n_valid, focal, 0.0)

    acc_ref[...] += jnp.sum(focal, keepdims=True)

    @pl.when(i == pl.num_programs(0) - 1)
    def _():
        out_ref[...] = acc_ref[...] / float(n_valid)


def focal_loss(logits: jax.Array, targets: jax.Array,
               alpha: float = 1.0, gamma: float = 2.0) -> jax.Array:
    """logits: (N, C) float (any float dtype), targets: (N,) int class ids -> scalar f32."""
    n, c = logits.shape
    c_pad = _round_up(c, 128)

    # Row-tile size: keep each logits tile around <= 2 MiB (Pallas double-buffers it),
    # well inside the scoped-VMEM defaults on v5e (16 MiB) / v6e / v7x (32 MiB).
    itemsize = jnp.dtype(logits.dtype).itemsize
    tile_n = 512
    while tile_n > 8 and tile_n * c_pad * itemsize > (2 << 20):
        tile_n //= 2
    tile_n = max(8, min(tile_n, _round_up(n, 8)))
    n_pad = _round_up(n, tile_n)

    # Pad class axis to a lane-dense multiple of 128 with a large negative constant
    # (does not affect max / exp), then pad batch rows (masked in-kernel).
    if c_pad > c:
        neg = float(jnp.finfo(logits.dtype).min) / 2.0
        logits = jnp.pad(logits, ((0, 0), (0, c_pad - c)), constant_values=neg)
    if n_pad > n:
        logits = jnp.pad(logits, ((0, n_pad - n), (0, 0)))

    targets_col = targets.astype(jnp.int32).reshape(n, 1)
    if n_pad > n:
        targets_col = jnp.pad(targets_col, ((0, n_pad - n), (0, 0)))

    grid = (n_pad // tile_n,)
    kernel = functools.partial(_focal_loss_kernel, alpha=float(alpha),
                               gamma=gamma, n_valid=n, tile_n=tile_n)

    out = pl.pallas_call(
        kernel,
        out_shape=jax.ShapeDtypeStruct((1, 1), jnp.float32),
        grid=grid,
        in_specs=[
            pl.BlockSpec((tile_n, c_pad), lambda i: (i, 0)),
            pl.BlockSpec((tile_n, 1), lambda i: (i, 0)),
        ],
        out_specs=pl.BlockSpec((1, 1), lambda i: (0, 0)),
        scratch_shapes=[pltpu.VMEM((1, 1), jnp.float32)],
        compiler_params=pltpu.CompilerParams(
            dimension_semantics=("arbitrary",)),
    )(logits, targets_col)
    return out[0, 0]


def _focal_loss_ref(logits, targets, alpha=1.0, gamma=2.0):
    # Pure-JAX reference for a sanity check.
    logp = jax.nn.log_softmax(logits.astype(jnp.float32), axis=-1)
    ce = -jnp.take_along_axis(logp, targets[:, None].astype(jnp.int32), axis=-1)[:, 0]
    pt = jnp.exp(-ce)
    return jnp.mean(alpha * (1.0 - pt) ** gamma * ce)


if __name__ == "__main__":
    key = jax.random.PRNGKey(0)
    k1, k2 = jax.random.split(key)
    N, C = 8, 32
    logits = jax.random.normal(k1, (N, C), dtype=jnp.float32)
    targets = jax.random.randint(k2, (N,), 0, C, dtype=jnp.int32)

    result = focal_loss(logits, targets)
    jax.block_until_ready(result)

    ref = _focal_loss_ref(logits, targets)
    assert jnp.allclose(result, ref, rtol=1e-5, atol=1e-6), (result, ref)

    print("KERNEL_OK")
</pallas_src>

<mosaic_0001>
module attributes {stable_mosaic.version = 11 : i64} {
  func.func @_focal_loss_kernel(%arg0: i32, %arg1: memref<8x128xf32, #tpu.memory_space<vmem>>, %arg2: memref<8x1xi32, #tpu.memory_space<vmem>>, %arg3: memref<1x1xf32, #tpu.memory_space<vmem>>, %arg4: memref<1x1xf32, #tpu.memory_space<vmem>>) attributes {dimension_semantics = [#tpu.dimension_semantics<arbitrary>], iteration_bounds = array<i64: 1>, scalar_prefetch = 0 : i64, scratch_operands = 1 : i64, tpu.core_type = #tpu.core_type<tc>, window_params = [{transform_indices = @transform_0, window_bounds = array<i64: 8, 128>}, {transform_indices = @transform_1, window_bounds = array<i64: 8, 1>}, {pipeline_mode = #tpu.pipeline_mode<synchronous>, transform_indices = @transform_2, window_bounds = array<i64: 1, 1>}]} {
    %c0_i32 = arith.constant 0 : i32
    %0 = arith.cmpi eq, %arg0, %c0_i32 : i32
    %1 = arith.extui %0 : i1 to i32
    %c0_i32_0 = arith.constant 0 : i32
    %2 = arith.cmpi ne, %1, %c0_i32_0 : i32
    scf.if %2 {
      %cst_19 = arith.constant 0.000000e+00 : f32
      %49 = vector.broadcast %cst_19 : f32 to vector<1x1xf32>
      %c0_20 = arith.constant 0 : index
      %c0_21 = arith.constant 0 : index
      %50 = vector.load %arg4[%c0_20, %c0_21] : memref<1x1xf32, #tpu.memory_space<vmem>>, vector<1x1xf32>
      tpu.vector_store %arg4[%c0_20, %c0_21], %49 {strides = array<i32>} : memref<1x1xf32, #tpu.memory_space<vmem>>, vector<1x1xf32>,
    } else {
    }
    %c0 = arith.constant 0 : index
    %c0_1 = arith.constant 0 : index
    %3 = vector.load %arg1[%c0, %c0_1] : memref<8x128xf32, #tpu.memory_space<vmem>>, vector<8x128xf32>
    %c0_2 = arith.constant 0 : index
    %c0_3 = arith.constant 0 : index
    %4 = vector.load %arg2[%c0_2, %c0_3] : memref<8x1xi32, #tpu.memory_space<vmem>>, vector<8x1xi32>
    %cst = arith.constant dense<0xFF800000> : vector<8xf32>
    %5 = vector.multi_reduction <maximumf>, %3, %cst [1] : vector<8x128xf32> to vector<8xf32>
    %6 = vector.shape_cast %5 : vector<8xf32> to vector<8x1xf32>
    %7 = vector.broadcast %6 : vector<8x1xf32> to vector<8x128xf32>
    %8 = arith.subf %3, %7 : vector<8x128xf32>
    %9 = math.exp %8 : vector<8x128xf32>
    %cst_4 = arith.constant dense<0.000000e+00> : vector<8xf32>
    %10 = vector.multi_reduction <add>, %9, %cst_4 [1] : vector<8x128xf32> to vector<8xf32>
    %11 = vector.shape_cast %10 : vector<8xf32> to vector<8x1xf32>
    %12 = math.log %11 : vector<8x1xf32>
    %13 = tpu.iota {dimensions = array<i32: 1>} : vector<8x128xi32>
    %14 = vector.broadcast %4 : vector<8x1xi32> to vector<8x128xi32>
    %15 = arith.cmpi eq, %13, %14 : vector<8x128xi32>
    %cst_5 = arith.constant 0.000000e+00 : f32
    %16 = vector.broadcast %cst_5 : f32 to vector<8x128xf32>
    %17 = arith.select %15, %8, %16 : vector<8x128xi1>, vector<8x128xf32>
    %cst_6 = arith.constant dense<0.000000e+00> : vector<8xf32>
    %18 = vector.multi_reduction <add>, %17, %cst_6 [1] : vector<8x128xf32> to vector<8xf32>
    %19 = vector.shape_cast %18 : vector<8xf32> to vector<8x1xf32>
    %20 = arith.subf %12, %19 : vector<8x1xf32>
    %cst_7 = arith.constant 0.000000e+00 : f32
    %21 = vector.broadcast %cst_7 : f32 to vector<8x1xf32>
    %22 = arith.subf %21, %20 : vector<8x1xf32>
    %23 = math.exp %22 : vector<8x1xf32>
    %cst_8 = arith.constant 1.000000e+00 : f32
    %24 = vector.broadcast %cst_8 : f32 to vector<8x1xf32>
    %25 = arith.subf %24, %23 : vector<8x1xf32>
    %26 = arith.mulf %25, %25 : vector<8x1xf32>
    %cst_9 = arith.constant 1.000000e+00 : f32
    %27 = vector.broadcast %cst_9 : f32 to vector<8x1xf32>
    %28 = arith.mulf %27, %26 : vector<8x1xf32>
    %29 = arith.mulf %28, %20 : vector<8x1xf32>
    %30 = tpu.iota {dimensions = array<i32: 0>} : vector<8x1xi32>
    %c8_i32 = arith.constant 8 : i32
    %31 = arith.muli %arg0, %c8_i32 : i32
    %32 = vector.broadcast %31 : i32 to vector<8x1xi32>
    %33 = arith.addi %30, %32 : vector<8x1xi32>
    %c8_i32_10 = arith.constant 8 : i32
    %34 = vector.broadcast %c8_i32_10 : i32 to vector<8x1xi32>
    %35 = arith.cmpi slt, %33, %34 : vector<8x1xi32>
    %cst_11 = arith.constant 0.000000e+00 : f32
    %36 = vector.broadcast %cst_11 : f32 to vector<8x1xf32>
    %37 = arith.select %35, %29, %36 : vector<8x1xi1>, vector<8x1xf32>
    %c0_12 = arith.constant 0 : index
    %c0_13 = arith.constant 0 : index
    %38 = vector.load %arg4[%c0_12, %c0_13] : memref<1x1xf32, #tpu.memory_space<vmem>>, vector<1x1xf32>
    %39 = vector.shape_cast %37 : vector<8x1xf32> to vector<1x8x1xf32>
    %cst_14 = arith.constant dense<0.000000e+00> : vector<1xf32>
    %40 = vector.multi_reduction <add>, %39, %cst_14 [1, 2] : vector<1x8x1xf32> to vector<1xf32>
    %41 = vector.shape_cast %40 : vector<1xf32> to vector<1x1x1xf32>
    %42 = vector.extract %41[0, 0, 0] : f32 from vector<1x1x1xf32>
    %43 = vector.broadcast %42 : f32 to vector<1x1xf32>
    %44 = arith.addf %38, %43 : vector<1x1xf32>
    %c0_15 = arith.constant 0 : index
    %c0_16 = arith.constant 0 : index
    %45 = vector.load %arg4[%c0_15, %c0_16] : memref<1x1xf32, #tpu.memory_space<vmem>>, vector<1x1xf32>
    tpu.vector_store %arg4[%c0_15, %c0_16], %44 {strides = array<i32>} : memref<1x1xf32, #tpu.memory_space<vmem>>, vector<1x1xf32>,
    %c0_i32_17 = arith.constant 0 : i32
    %46 = arith.cmpi eq, %arg0, %c0_i32_17 : i32
    %47 = arith.extui %46 : i1 to i32
    %c0_i32_18 = arith.constant 0 : i32
    %48 = arith.cmpi ne, %47, %c0_i32_18 : i32
    scf.if %48 {
      %c0_19 = arith.constant 0 : index
      %c0_20 = arith.constant 0 : index
      %49 = vector.load %arg4[%c0_19, %c0_20] : memref<1x1xf32, #tpu.memory_space<vmem>>, vector<1x1xf32>
      %cst_21 = arith.constant 8.000000e+00 : f32
      %50 = vector.broadcast %cst_21 : f32 to vector<1x1xf32>
      %51 = arith.divf %49, %50 : vector<1x1xf32>
      %c0_22 = arith.constant 0 : index
      %c0_23 = arith.constant 0 : index
      %52 = vector.load %arg3[%c0_22, %c0_23] : memref<1x1xf32, #tpu.memory_space<vmem>>, vector<1x1xf32>
      tpu.vector_store %arg3[%c0_22, %c0_23], %51 {strides = array<i32>} : memref<1x1xf32, #tpu.memory_space<vmem>>, vector<1x1xf32>,
    } else {
    }
    return
  }
  func.func @transform_0(%arg0: i32) -> (i32, i32) {
    %c0_i32 = arith.constant 0 : i32
    %c0_i32_0 = arith.constant 0 : i32
    return %arg0, %c0_i32 : i32, i32
  }
  func.func @transform_1(%arg0: i32) -> (i32, i32) {
    %c0_i32 = arith.constant 0 : i32
    %c0_i32_0 = arith.constant 0 : i32
    return %arg0, %c0_i32 : i32, i32
  }
  func.func @transform_2(%arg0: i32) -> (i32, i32) {
    %c0_i32 = arith.constant 0 : i32
    %c0_i32_0 = arith.constant 0 : i32
    %c0_i32_1 = arith.constant 0 : i32
    return %c0_i32, %c0_i32_0 : i32, i32
  }
}

</mosaic_0001>

<bundles_post_ra>
// kernel: tpu_custom_call.1
= control target key start
LH: loop header
LB: loop body
LE: loop exit
PB: predicated region body
PF: predicated region fallthrough
CT: control target
= control target key end

     0   :  { %s153_s0 = inlined_call_operand.vmem [shape: f32[8,128], index: 0, kind: input, shape index: {}]   ;;  %s154_s1 = inlined_call_operand.vmem [shape: s32[8,1], index: 1, kind: input, shape index: {}]   ;;  %s155_s2 = inlined_call_operand.hbm [shape: f32[1,1], index: 2, kind: output, shape index: {}]  }
   0x1   :  { %v18_v0 = vld [vmem:[%s153_s0] sm:$0xff] }
   0x2   :  { %7 = vsyncpa [#allocation4], 0  ;;  %20 = vmax.xlane.f32.xlu0 %v18_v0  ;;  %v123_v1 = vmov 0   ;;  %v19_v2 = vld [vmem:[%s154_s1] sm:$0xff]  ;;  %v29_v6 = vlaneseq  ;;  %vm53_vm1 = vcmask 7168   ;;  %vm16_vm2 = vcmask 0  }
   0x3   :  { %94 = vset.pattern.permute.xlu0 %v123_v1  ;;  %v124_v23 = vmov 0.0   ;;  %s125_s1 = smov [#allocation3]  }
   0x4   :  { %v30_v7 = vand.u32 127, %v29_v6  ;;  %17 = vst.msk [vmem:[#allocation2] sm:$0x1] %vm16_vm2, %v124_v23  ;;  %s81_s13 = sshll.u32 %s125_s1, 4  ;;  %s82_s13 = int_to_ptr.vmem [resolvable:$true] %s81_s13 }
   0x5   :  { %s101_s14 = scalar_lea.vmem %s82_s13, 16  ;;  %s105_s15 = scalar_lea.vmem %s82_s13, 32 }
   0x6   :  { %p102_p0 = scmp.ne.s32.totalorder %s82_s13, %s101_s14  ;;  %p106_p1 = scmp.lt.s32.totalorder %s82_s13, %s82_s13 }
   0x7   :  { %p107_p2 = scmp.lt.s32.totalorder %s105_s15, %s101_s14 }
   0x9   :  { %p108_p3 = por %p107_p2, %p106_p1 }
   0xb   :  { %v52_v31 = vld [vmem:[#allocation2] sm:$0x1]  ;;  %p109_p4 = pnand %p108_p3, %p102_p0 }
  0x18   :  { %32 = vperm.xlu0 %94, %v19_v2  }
  0x8b   :  { %v21_v3 = vpop.xlane.xlu0 %20 }
  0x8c   :  { %v22_v4 = vsub.f32 %v18_v0, %v21_v3 }
  0x8e   :  { %v23_v5 = vmul.f32 1.442695, %v22_v4 }
  0x90   :  { %95 = vpow2.f32 %v23_v5 }
  0x93   :  { %v33_v8 = vpop.permute.xlu0 %32 }
  0x94   :  { %vm34_vm0 = vcmp.eq.s32.totalorder %v30_v7, %v33_v8 }
  0x95   :  { %v35_v10 = vsel %vm34_vm0, %v22_v4, 0.0 }
  0x9d   :  { %v96_v9 = vpop.eup %95 }
  0x9e   :  { %25 = vadd.xlane.f32.xlu1 %v96_v9 }
  0xa2   :  { %36 = vadd.xlane.f32.xlu1 %v35_v10 }
 0x127   :  { %v26_v11 = vpop.xlane.xlu1 %25 }
 0x128   :  { %97 = vlog2.f32 %v26_v11 }
 0x12b   :  { %v37_v14 = vpop.xlane.xlu1 %36 }
 0x135   :  { %v98_v12 = vpop.eup %97 }
 0x136   :  { %v28_v13 = vmul.f32 0.6931472, %v98_v12 }
 0x138   :  { %v38_v15 = vsub.f32 %v28_v13, %v37_v14 }
 0x13a   :  { %v39_v16 = vsub.f32 0.0, %v38_v15 }
 0x13c   :  { %v40_v17 = vmul.f32 1.442695, %v39_v16 }
 0x13e   :  { %99 = vpow2.f32 %v40_v17 }
 0x14b   :  { %v100_v18 = vpop.eup %99 }
 0x14c   :  { %v42_v19 = vsub.f32 1.0, %v100_v18 }
 0x14e   :  { %v43_v20 = vmul.f32 %v42_v19, %v42_v19 }
 0x150   :  { %v44_v21 = vmul.f32 %v43_v20, %v38_v15 }
 0x152   :  { %v54_v22 = vsel %vm53_vm1, %v44_v21, 0.0 }
 0x153   :  { %55 = vadd.xlane.f32.xlu1 %v54_v22 }
 0x1dc   :  { %v56_v24 = vpop.xlane.xlu1 %55 }
 0x1dd   :  { %v57_v25 = vrot.slane %v56_v24, 4 }
 0x1df   :  { %v58_v26 = vadd.f32 %v57_v25, %v56_v24 }
 0x1e1   :  { %v59_v27 = vrot.slane %v58_v26, 2 }
 0x1e3   :  { %v60_v28 = vadd.f32 %v59_v27, %v58_v26 }
 0x1e5   :  { %v61_v29 = vrot.slane %v60_v28, 1 }
 0x1e7   :  { %v62_v30 = vadd.f32 %v61_v29, %v60_v28 }
 0x1e9   :  { %89 = vpush %v62_v30 }
 0x21a   :  { %s90_s0 = spop %89 }
 0x21b   :  { %v64_v32 = vstv %s90_s0 }
 0x21c   :  { %v65_v33 = vadd.f32 %v64_v32, %v52_v31 }
 0x21e   :  { %67 = vst.msk [vmem:[#allocation2] sm:$0x1] %vm16_vm2, %v65_v33 }
 0x225   :  { %v71_v34 = vld [vmem:[#allocation2] sm:$0x1] }
 0x226   :  { %v73_v35 = vmul.f32 0.125, %v71_v34 }
 0x228   :  { %74 = vst.msk [vmem:[#allocation3] sm:$0x1] %vm16_vm2, %v73_v35 }
 0x229   :  { %112 = shalt.err (!%p109_p4)
}
 0x22a   :  { %84 = dma.vmem_to_hbm [thread:$0]  %s82_s13, 16, %s155_s2, [#allocation4]  }
 0x22b   :  { %121 = dma.done.wait [#allocation4], 16  }
 0x22c   :  { %122 = vsyncadd [#allocation4], 4294967280 }
 0x22d   :  { %88 = vsyncpa [#allocation4], 1 }

</bundles_post_ra>
